<compile_context>
chip_gen: v7x
topology: tpu7x:2x2x1
jax: 0.10.0
libtpu: 0.0.40
codegen_flags: <defaults>
</compile_context>

<pallas_src>
import jax
import jax.numpy as jnp
from jax.experimental import pallas as pl
from jax.experimental.pallas import tpu as pltpu


def _mlp_kernel(x_ref, w1_ref, b1_ref, w2_ref, b2_ref, w3_ref, b3_ref, o_ref):
    cdt = w1_ref.dtype  # matmul operand dtype (f32 or bf16); accumulation is always f32

    # In-kernel cast of the streamed activation (VPU pack, hidden under the x DMA).
    x = x_ref[...].astype(cdt)

    h1 = jnp.dot(x, w1_ref[...], preferred_element_type=jnp.float32) + b1_ref[...]
    h1 = jnp.maximum(h1, 0.0).astype(cdt)

    h2 = jnp.dot(h1, w2_ref[...], preferred_element_type=jnp.float32) + b2_ref[...]
    h2 = jnp.maximum(h2, 0.0).astype(cdt)

    # Final Linear(width, 1), transposed: contract the width axis of the (1, width_p)
    # w3 row against the width axis of h2 -> lane-dense (1, block_b).
    yT = jax.lax.dot_general(
        w3_ref[...], h2,
        dimension_numbers=(((1,), (1,)), ((), ())),
        preferred_element_type=jnp.float32,
    )
    o_ref[...] = (yT + b3_ref[...]).astype(o_ref.dtype)


def _physical_vmem_bytes():
    """Best-effort physical VMEM query; conservative (v7x per-TC) fallback."""
    try:
        info = pltpu.get_tpu_info()
        for attr in ("vmem_capacity_bytes", "vmem_size_bytes", "vmem_bytes"):
            v = getattr(info, attr, None)
            if isinstance(v, int) and v > 0:
                return v
    except Exception:
        pass
    return 64 * 1024 * 1024


def _round_down(v, m):
    return (v // m) * m


def _round_up(v, m):
    return ((v + m - 1) // m) * m


def nn_model_forward(x, params, *, block_b=None, compute_dtype=None, x_buffer_count=None):
    """Forward pass. x: (B, ...) -> flattened to (B, dim). Returns (B, 1).

    compute_dtype=jnp.bfloat16 runs the matmuls in bf16 (f32 accumulation, f32 bias/ReLU
    epilogue).  The cast happens in-kernel, so the HBM-byte saving for the x stream is
    realized when x is already stored in bf16 upstream; recommended on v5e (lowest HBM BW).
    """
    w1, b1, w2, b2, w3, b3 = params
    B = x.shape[0]
    x2d = x.reshape(B, -1)                       # nn.Flatten
    dim = x2d.shape[1]
    width = w1.shape[1]
    out_dtype = x2d.dtype

    if compute_dtype is None:
        compute_dtype = x2d.dtype
    compute_dtype = jnp.dtype(compute_dtype)
    csize = compute_dtype.itemsize
    x_csize = jnp.dtype(x2d.dtype).itemsize
    out_csize = jnp.dtype(out_dtype).itemsize

    # ---- Zero-pad width to a lane-dense multiple of 128 (exact: pads contribute 0). ----
    width_p = _round_up(width, 128)
    pad = width_p - width
    if pad:
        w1 = jnp.pad(w1, ((0, 0), (0, pad)))
        b1 = jnp.pad(b1, ((0, pad),))
        w2 = jnp.pad(w2, ((0, pad), (0, pad)))
        b2 = jnp.pad(b2, ((0, pad),))
        w3 = jnp.pad(w3, ((0, pad), (0, 0)))

    # Matmul operands in compute_dtype; biases stay f32 (f32 epilogue incl. on v5e).
    w1_c = w1.astype(compute_dtype)
    w2_c = w2.astype(compute_dtype)
    w3_row = w3.reshape(1, width_p).astype(compute_dtype)
    b1_2d = b1.reshape(1, width_p).astype(jnp.float32)
    b2_2d = b2.reshape(1, width_p).astype(jnp.float32)
    b3_2d = b3.reshape(1, 1).astype(jnp.float32)

    # ---- VMEM budget (per generation) and resident-weight footprint. ----
    phys_vmem = _physical_vmem_bytes()
    cap = min(phys_vmem * 3 // 4, 100 * 1024 * 1024)   # ~48 MiB on v7x, ~96 MiB on v5e/v6e

    weight_core = ((dim * width_p + width_p * width_p + width_p) * csize
                   + (2 * width_p + 1) * 4)
    wbuf = 2
    if 2 * weight_core > cap // 2:
        # Large flattened dim: single-buffer the resident weights instead of letting the
        # pipeline double-buffer them out of VMEM.
        # TODO(synk): for dims where even one W1 copy exceeds the budget, tile the K=dim
        # axis with an f32 accumulator scratch ('parallel','arbitrary' semantics).
        wbuf = 1
    weight_vmem = wbuf * weight_core

    x_bufs = int(x_buffer_count) if x_buffer_count is not None else 2
    # Per-batch-row VMEM: buffered x tile + f32 h1/h2 (+ compute-dtype copies, bounded
    # by f32) + double-buffered (1, block_b) output column.
    per_row = x_bufs * dim * x_csize + 4 * width_p * 4 + 2 * out_csize

    # ---- Batch-tile selection (VMEM-budget derived; keep nb >= 2 for v7x when cheap). ----
    if block_b is None:
        avail = cap - weight_vmem - (4 << 20)
        if avail <= per_row * 128:
            cand = 128
        else:
            cand = avail // per_row
        cand = min(cand, 8192)
        if cand >= 1024:
            cand = _round_down(cand, 512)
        else:
            cand = max(_round_down(cand, 128), 128)
        if B <= cand:
            if B >= 256:
                half = _round_up(-(-B // 2), 128)   # split into >=2 lane-dense tiles
                block_b = half if half < B else B
            else:
                block_b = B
        else:
            block_b = cand                           # B > cand  =>  nb >= 2 automatically
    if not (block_b == B or block_b % 128 == 0):
        raise ValueError(
            f"block_b must equal the batch size ({B}) or be a multiple of 128, got {block_b}")
    nb = pl.cdiv(B, block_b)

    # ---- VMEM limit from actual tile sizes + headroom, clamped to the generation cap. ----
    needed = weight_vmem + block_b * per_row + (4 << 20)
    vmem_limit = int(min(max(needed * 5 // 4, 16 << 20), cap))

    # ---- Cost estimate (advisory). ----
    flops = 2 * B * (dim * width_p + width_p * width_p + width_p)
    bytes_accessed = (
        B * dim * x_csize                                      # x stream (storage dtype)
        + (dim * width_p + width_p * width_p + width_p) * csize
        + (2 * width_p + 1) * 4
        + B * out_csize
    )

    w_kwargs = {"pipeline_mode": pl.Buffered(1)} if wbuf == 1 else {}
    x_kwargs = ({"pipeline_mode": pl.Buffered(x_bufs)}
                if (x_buffer_count is not None and x_bufs != 2) else {})

    yT = pl.pallas_call(
        _mlp_kernel,
        out_shape=jax.ShapeDtypeStruct((1, B), out_dtype),
        grid_spec=pltpu.PrefetchScalarGridSpec(
            num_scalar_prefetch=0,
            grid=(nb,),
            in_specs=[
                pl.BlockSpec((block_b, dim), lambda i: (i, 0), **x_kwargs),   # x (streamed)
                pl.BlockSpec((dim, width_p), lambda i: (0, 0), **w_kwargs),   # W1 (resident)
                pl.BlockSpec((1, width_p), lambda i: (0, 0)),                 # b1
                pl.BlockSpec((width_p, width_p), lambda i: (0, 0), **w_kwargs),  # W2
                pl.BlockSpec((1, width_p), lambda i: (0, 0)),                 # b2
                pl.BlockSpec((1, width_p), lambda i: (0, 0)),                 # w3 row
                pl.BlockSpec((1, 1), lambda i: (0, 0)),                       # b3
            ],
            out_specs=pl.BlockSpec((1, block_b), lambda i: (0, i)),  # lane-dense output
        ),
        compiler_params=pltpu.CompilerParams(
            dimension_semantics=("parallel",),
            vmem_limit_bytes=vmem_limit,
        ),
        cost_estimate=pl.CostEstimate(
            flops=flops, transcendentals=0, bytes_accessed=bytes_accessed),
    )(x2d, w1_c, b1_2d, w2_c, b2_2d, w3_row, b3_2d)

    return yT.reshape(B, 1)


def init_params(key, dim, width=64, dtype=jnp.float32):
    """Deterministic synthetic parameter init (shapes match the nn.Linear layers)."""
    ks = jax.random.split(key, 6)
    scale1 = 1.0 / jnp.sqrt(dim)
    scale2 = 1.0 / jnp.sqrt(width)
    # Stored as (in, out) — transpose of PyTorch's (out, in) convention.
    w1 = jax.random.uniform(ks[0], (dim, width), dtype, -scale1, scale1)
    b1 = jax.random.uniform(ks[1], (width,), dtype, -scale1, scale1)
    w2 = jax.random.uniform(ks[2], (width, width), dtype, -scale2, scale2)
    b2 = jax.random.uniform(ks[3], (width,), dtype, -scale2, scale2)
    w3 = jax.random.uniform(ks[4], (width, 1), dtype, -scale2, scale2)
    b3 = jax.random.uniform(ks[5], (1,), dtype, -scale2, scale2)
    return (w1, b1, w2, b2, w3, b3)


def reference_forward(x, params):
    w1, b1, w2, b2, w3, b3 = params
    x2d = x.reshape(x.shape[0], -1)
    h1 = jnp.maximum(x2d @ w1 + b1, 0.0)
    h2 = jnp.maximum(h1 @ w2 + b2, 0.0)
    return h2 @ w3 + b3


if __name__ == "__main__":
    key = jax.random.PRNGKey(0)
    kx, kp = jax.random.split(key)

    batch, dim, width = 256, 32, 64
    x = jax.random.normal(kx, (batch, dim), dtype=jnp.float32)
    params = init_params(kp, dim, width)
    y_ref = reference_forward(x, params)

    # Default path: block_b autoscaled (B=256 -> two 128-row tiles, nb=2 so both v7x TCs
    # get work; v5e/v6e just see a 2-step pipelined grid).
    y = jax.block_until_ready(nn_model_forward(x, params))
    assert y.shape == (batch, 1), y.shape
    assert jnp.allclose(y, y_ref, atol=1e-5, rtol=1e-5), (
        f"max err {float(jnp.max(jnp.abs(y - y_ref)))}")

    # Explicit single-tile path (block_b == B, nb=1).
    y_one = jax.block_until_ready(nn_model_forward(x, params, block_b=batch))
    assert jnp.allclose(y_one, y_ref, atol=1e-5, rtol=1e-5)

    # bf16 matmul path: x cast in-kernel (no extra wrapper HBM pass), f32 accumulation
    # and f32 bias/ReLU epilogue — looser tolerance reflects the bf16 operand cast.
    y_bf16 = jax.block_until_ready(
        nn_model_forward(x, params, compute_dtype=jnp.bfloat16))
    assert y_bf16.shape == (batch, 1), y_bf16.shape
    assert jnp.allclose(y_bf16, y_ref, atol=1e-1, rtol=1e-1), (
        f"max err {float(jnp.max(jnp.abs(y_bf16 - y_ref)))}")

    print("KERNEL_OK")
</pallas_src>

<mosaic_0001>
module attributes {stable_mosaic.version = 11 : i64} {
  func.func @_mlp_kernel(%arg0: i32, %arg1: memref<128x32xf32, #tpu.memory_space<vmem>>, %arg2: memref<32x128xf32, #tpu.memory_space<vmem>>, %arg3: memref<1x128xf32, #tpu.memory_space<vmem>>, %arg4: memref<128x128xf32, #tpu.memory_space<vmem>>, %arg5: memref<1x128xf32, #tpu.memory_space<vmem>>, %arg6: memref<1x128xf32, #tpu.memory_space<vmem>>, %arg7: memref<1x1xf32, #tpu.memory_space<vmem>>, %arg8: memref<1x128xf32, #tpu.memory_space<vmem>>) attributes {dimension_semantics = [#tpu.dimension_semantics<parallel>], iteration_bounds = array<i64: 2>, scalar_prefetch = 0 : i64, scratch_operands = 0 : i64, tpu.core_type = #tpu.core_type<tc>, window_params = [{transform_indices = @transform_0, window_bounds = array<i64: 128, 32>}, {pipeline_mode = #tpu.pipeline_mode<synchronous>, transform_indices = @transform_1, window_bounds = array<i64: 32, 128>}, {pipeline_mode = #tpu.pipeline_mode<synchronous>, transform_indices = @transform_2, window_bounds = array<i64: 1, 128>}, {pipeline_mode = #tpu.pipeline_mode<synchronous>, transform_indices = @transform_3, window_bounds = array<i64: 128, 128>}, {pipeline_mode = #tpu.pipeline_mode<synchronous>, transform_indices = @transform_4, window_bounds = array<i64: 1, 128>}, {pipeline_mode = #tpu.pipeline_mode<synchronous>, transform_indices = @transform_5, window_bounds = array<i64: 1, 128>}, {pipeline_mode = #tpu.pipeline_mode<synchronous>, transform_indices = @transform_6, window_bounds = array<i64: 1, 1>}, {transform_indices = @transform_7, window_bounds = array<i64: 1, 128>}]} {
    %c0 = arith.constant 0 : index
    %c0_0 = arith.constant 0 : index
    %0 = vector.load %arg1[%c0, %c0_0] : memref<128x32xf32, #tpu.memory_space<vmem>>, vector<128x32xf32>
    %c0_1 = arith.constant 0 : index
    %c0_2 = arith.constant 0 : index
    %1 = vector.load %arg2[%c0_1, %c0_2] : memref<32x128xf32, #tpu.memory_space<vmem>>, vector<32x128xf32>
    %cst = arith.constant dense<0.000000e+00> : vector<128x128xf32>
    %2 = tpu.matmul %0, %1, %cst {dimension_numbers = #tpu.dot_dimension_numbers<[1], [0], [0], [1], [0, 0, 1, 1], [], []>} : vector<128x32xf32>, vector<32x128xf32>, vector<128x128xf32> -> vector<128x128xf32>
    %c0_3 = arith.constant 0 : index
    %c0_4 = arith.constant 0 : index
    %3 = vector.load %arg3[%c0_3, %c0_4] : memref<1x128xf32, #tpu.memory_space<vmem>>, vector<1x128xf32>
    %4 = vector.broadcast %3 : vector<1x128xf32> to vector<128x128xf32>
    %5 = arith.addf %2, %4 : vector<128x128xf32>
    %cst_5 = arith.constant 0.000000e+00 : f32
    %6 = vector.broadcast %cst_5 : f32 to vector<128x128xf32>
    %7 = arith.maximumf %5, %6 : vector<128x128xf32>
    %c0_6 = arith.constant 0 : index
    %c0_7 = arith.constant 0 : index
    %8 = vector.load %arg4[%c0_6, %c0_7] : memref<128x128xf32, #tpu.memory_space<vmem>>, vector<128x128xf32>
    %cst_8 = arith.constant dense<0.000000e+00> : vector<128x128xf32>
    %9 = tpu.matmul %7, %8, %cst_8 {dimension_numbers = #tpu.dot_dimension_numbers<[1], [0], [0], [1], [0, 0, 1, 1], [], []>} : vector<128x128xf32>, vector<128x128xf32>, vector<128x128xf32> -> vector<128x128xf32>
    %c0_9 = arith.constant 0 : index
    %c0_10 = arith.constant 0 : index
    %10 = vector.load %arg5[%c0_9, %c0_10] : memref<1x128xf32, #tpu.memory_space<vmem>>, vector<1x128xf32>
    %11 = vector.broadcast %10 : vector<1x128xf32> to vector<128x128xf32>
    %12 = arith.addf %9, %11 : vector<128x128xf32>
    %cst_11 = arith.constant 0.000000e+00 : f32
    %13 = vector.broadcast %cst_11 : f32 to vector<128x128xf32>
    %14 = arith.maximumf %12, %13 : vector<128x128xf32>
    %c0_12 = arith.constant 0 : index
    %c0_13 = arith.constant 0 : index
    %15 = vector.load %arg6[%c0_12, %c0_13] : memref<1x128xf32, #tpu.memory_space<vmem>>, vector<1x128xf32>
    %cst_14 = arith.constant dense<0.000000e+00> : vector<1x128xf32>
    %16 = tpu.matmul %15, %14, %cst_14 {dimension_numbers = #tpu.dot_dimension_numbers<[1], [1], [0], [0], [0, 0, 1, 0], [], []>} : vector<1x128xf32>, vector<128x128xf32>, vector<1x128xf32> -> vector<1x128xf32>
    %c0_15 = arith.constant 0 : index
    %c0_16 = arith.constant 0 : index
    %17 = vector.load %arg7[%c0_15, %c0_16] : memref<1x1xf32, #tpu.memory_space<vmem>>, vector<1x1xf32>
    %18 = vector.broadcast %17 : vector<1x1xf32> to vector<1x128xf32>
    %19 = arith.addf %16, %18 : vector<1x128xf32>
    %c0_17 = arith.constant 0 : index
    %c0_18 = arith.constant 0 : index
    %20 = vector.load %arg8[%c0_17, %c0_18] : memref<1x128xf32, #tpu.memory_space<vmem>>, vector<1x128xf32>
    tpu.vector_store %arg8[%c0_17, %c0_18], %19 {strides = array<i32>} : memref<1x128xf32, #tpu.memory_space<vmem>>, vector<1x128xf32>,
    return
  }
  func.func @transform_0(%arg0: i32) -> (i32, i32) {
    %c0_i32 = arith.constant 0 : i32
    %c0_i32_0 = arith.constant 0 : i32
    return %arg0, %c0_i32 : i32, i32
  }
  func.func @transform_1(%arg0: i32) -> (i32, i32) {
    %c0_i32 = arith.constant 0 : i32
    %c0_i32_0 = arith.constant 0 : i32
    %c0_i32_1 = arith.constant 0 : i32
    return %c0_i32, %c0_i32_0 : i32, i32
  }
  func.func @transform_2(%arg0: i32) -> (i32, i32) {
    %c0_i32 = arith.constant 0 : i32
    %c0_i32_0 = arith.constant 0 : i32
    %c0_i32_1 = arith.constant 0 : i32
    return %c0_i32, %c0_i32_0 : i32, i32
  }
  func.func @transform_3(%arg0: i32) -> (i32, i32) {
    %c0_i32 = arith.constant 0 : i32
    %c0_i32_0 = arith.constant 0 : i32
    %c0_i32_1 = arith.constant 0 : i32
    return %c0_i32, %c0_i32_0 : i32, i32
  }
  func.func @transform_4(%arg0: i32) -> (i32, i32) {
    %c0_i32 = arith.constant 0 : i32
    %c0_i32_0 = arith.constant 0 : i32
    %c0_i32_1 = arith.constant 0 : i32
    return %c0_i32, %c0_i32_0 : i32, i32
  }
  func.func @transform_5(%arg0: i32) -> (i32, i32) {
    %c0_i32 = arith.constant 0 : i32
    %c0_i32_0 = arith.constant 0 : i32
    %c0_i32_1 = arith.constant 0 : i32
    return %c0_i32, %c0_i32_0 : i32, i32
  }
  func.func @transform_6(%arg0: i32) -> (i32, i32) {
    %c0_i32 = arith.constant 0 : i32
    %c0_i32_0 = arith.constant 0 : i32
    %c0_i32_1 = arith.constant 0 : i32
    return %c0_i32, %c0_i32_0 : i32, i32
  }
  func.func @transform_7(%arg0: i32) -> (i32, i32) {
    %c0_i32 = arith.constant 0 : i32
    %c0_i32_0 = arith.constant 0 : i32
    return %c0_i32, %arg0 : i32, i32
  }
}

</mosaic_0001>

<bundles_post_ra>
// kernel: tpu_custom_call.1
= control target key start
LH: loop header
LB: loop body
LE: loop exit
PB: predicated region body
PF: predicated region fallthrough
CT: control target
= control target key end

     0   :  { %s1500_s0 = inlined_call_operand.vmem [shape: f32[256,32], index: 0, kind: input, shape index: {}]   ;;  %s1501_s1 = inlined_call_operand.vmem [shape: f32[32,128], index: 1, kind: input, shape index: {}]   ;;  %s1502_s2 = inlined_call_operand.vmem [shape: f32[1,128], index: 2, kind: input, shape index: {}]   ;;  %s1503_s3 = inlined_call_operand.vmem [shape: f32[128,128], index: 3, kind: input, shape index: {}]   ;;  %s1504_s4 = inlined_call_operand.vmem [shape: f32[1,128], index: 4, kind: input, shape index: {}]   ;;  %s1505_s5 = inlined_call_operand.vmem [shape: f32[1,128], index: 5, kind: input, shape index: {}]   ;;  %s1506_s6 = inlined_call_operand.<no memory space> [shape: f32[1,1], index: 6, kind: input, shape index: {}]   ;;  %s1507_s7 = inlined_call_operand.hbm [shape: f32[1,256], index: 7, kind: output, shape index: {}]  }
   0x1   :  { %v12_v0 = vstv %s1506_s6 }
   0x2   :  { %13 = vst [vmem:[#allocation2] sm:$0x1] %v12_v0 }
   0x3   :  { %14 = vsyncpa [#allocation4], 0 }
   0x4   :  { %16 = vsyncpa [#allocation4 + $0x1], 0  ;;  %s1290_s26 = smov 0   ;;  %s1292_s27 = smov 0  }
   0x5   :  { %s1294_s28 = smov 0   ;;  %s1296_s29 = smov 0  }
   0x6 LB: > { %s850_s6 = sadd.s32 4294967295, %s1240_s29   ;;  %s851_s30 = sadd.s32 4294967294, %s1240_s29   ;;  %s1240_s29 = sphi %s1296_s29, %s1513_s29   ;;  %s1236_s28 = sphi %s1294_s28, %s1512_s28   ;;  %s1232_s27 = sphi %s1292_s27, %s1511_s27   ;;  %s1228_s26 = sphi %s1290_s26, %s1510_s26  }
   0x7   : > { %s1313_s8 = sadd.s32 1, %s1240_s29   ;;  %s181_s9 = sadd.s32 1, %s1236_s28 }
   0x8   : > { %s178_s10 = ssub.s32 %s1240_s29, %s1313_s8  ;;  %p191_p0 = scmp.ne.s32.totalorder %s1236_s28, %s1232_s27 }
   0x9   : > { %p179_p1 = scmp.eq.s32.totalorder %s178_s10, 0  ;;  %p192_p2 = scmp.eq.s32.totalorder %s850_s6, 1 }
   0xa   : > { %p197_p3 = scmp.ne.s32.totalorder %s1232_s27, %s1228_s26  ;;  %p198_p4 = scmp.eq.s32.totalorder %s851_s30, 1 }
   0xb   : > { %s1323_s11 = scalar_select %p179_p1, %s1236_s28, %s181_s9  }
   0xc   : > { %p1325_p5 = por %p192_p2, %p191_p0  ;;  %p1329_p6 = por %p198_p4, %p197_p3 }
   0xd   : > { %p854_p7 = scmp.ge.s32.totalorder %s1240_s29, 1  ;;  %p243_p8 = scmp.lt.s32.totalorder %s1240_s29, 3 }
   0xf   : > { %p244_p9 = pnand %p854_p7, %p243_p8 }
  0x10   : > { %v296_v1 = vld [vmem:[%s1501_s1] sm:$0xff] (!%p244_p9)  ;;  %v297_v2 = vld [vmem:[%s1501_s1 + $0x8] sm:$0xff] (!%p244_p9)  ;;  %v298_v3 = vld [vmem:[%s1501_s1 + $0x10] sm:$0xff] (!%p244_p9)  ;;  %s1344_s20 = sshll.u32 (!%p244_p9), %s850_s6, 4  ;;  %vm307_vm0 = vcmask (!%p244_p9), 261120   ;;  %vm1243_vm1 = vmmov (!%p244_p9), 0  }
  0x11   : > { %247 = sbr.rel (%p244_p9) target bundleno = 758 (0x2f6), region = 48  ;;  %v1070_v4 = vpack.c.bf16 (!%p244_p9), %v297_v2, %v296_v1  ;;  %v299_v5 = vld [vmem:[%s1501_s1 + $0x18] sm:$0xff] (!%p244_p9)  ;;  %p275_p10 = scmp.lt.s32.totalorder (!%p244_p9), %s1344_s20, 31  ;;  %v517_v7 = vld [vmem:[%s1503_s3] sm:$0xff] (!%p244_p9)  ;;  %v518_v8 = vld [vmem:[%s1503_s3 + $0x8] sm:$0xff] (!%p244_p9) }
  0x12   : > { %v1074_v6 = vpack.c.bf16 (!%p244_p9), %v299_v5, %v298_v3  ;;  %v1078_v9 = vpack.c.bf16 (!%p244_p9), %v518_v8, %v517_v7  ;;  %v519_v10 = vld [vmem:[%s1503_s3 + $0x10] sm:$0xff] (!%p244_p9)  ;;  %v520_v11 = vld [vmem:[%s1503_s3 + $0x18] sm:$0xff] (!%p244_p9)  ;;  %v521_v16 = vld [vmem:[%s1503_s3 + $0x20] sm:$0xff] (!%p244_p9)  ;;  %s272_s22 = sand.u32 (!%p244_p9), 1, %s1232_s27   ;;  %s1246_s14 = smov (!%p244_p9), [#allocation3]  }
  0x13   : > { %1071 = vmatprep.subr.bf16.mxu1 (!%p244_p9), %v1070_v4  ;;  %v1082_v15 = vpack.c.bf16 (!%p244_p9), %v520_v11, %v519_v10  ;;  %v522_v17 = vld [vmem:[%s1503_s3 + $0x28] sm:$0xff] (!%p244_p9)  ;;  %v523_v21 = vld [vmem:[%s1503_s3 + $0x30] sm:$0xff] (!%p244_p9)  ;;  %v524_v22 = vld [vmem:[%s1503_s3 + $0x38] sm:$0xff] (!%p244_p9)  ;;  %s273_s23 = scalar_lea.vmem (!%p244_p9), [#allocation3], %s272_s22  ;;  %s1182_s16 = sshll.u32 (!%p244_p9), %s1246_s14, 4  ;;  %s1183_s16 = int_to_ptr.vmem [resolvable:$false] %s1182_s16 }
  0x14   : > { %1073 = vmatpush3.bf16.msra.mxu1 (!%p244_p9), %v1070_v4  ;;  %v1086_v20 = vpack.c.bf16 (!%p244_p9), %v522_v17, %v521_v16  ;;  %v1090_v25 = vpack.c.bf16 (!%p244_p9), %v524_v22, %v523_v21  ;;  %v525_v26 = vld [vmem:[%s1503_s3 + $0x40] sm:$0xff] (!%p244_p9)  ;;  %v526_v27 = vld [vmem:[%s1503_s3 + $0x48] sm:$0xff] (!%p244_p9)  ;;  %v527_v31 = vld [vmem:[%s1503_s3 + $0x50] sm:$0xff] (!%p244_p9)  ;;  %s796_s24 = sshll.u32 (!%p244_p9), %s273_s23, 4  ;;  %s1184_s17 = scalar_lea.vmem (!%p244_p9), %s1183_s16, 32  ;;  %s1460_s24 = int_to_ptr.vmem [resolvable:$true] %s796_s24 }
  0x15   : > { %1075 = vmatprep.subr.bf16.mxu1 (!%p244_p9), %v1074_v6  ;;  %v1094_v30 = vpack.c.bf16 (!%p244_p9), %v526_v27, %v525_v26  ;;  %v528_v32 = vld [vmem:[%s1503_s3 + $0x58] sm:$0xff] (!%p244_p9)  ;;  %v529_v36 = vld [vmem:[%s1503_s3 + $0x60] sm:$0xff] (!%p244_p9)  ;;  %v530_v37 = vld [vmem:[%s1503_s3 + $0x68] sm:$0xff] (!%p244_p9)  ;;  %s1178_s10 = scalar_lea.vmem (!%p244_p9), %s1460_s24, 16  ;;  %p1185_p0 = scmp.lt.s32.totalorder (!%p244_p9), %s1460_s24, %s1183_s16 }
  0x16   : > { %v1098_v35 = vpack.c.bf16 (!%p244_p9), %v528_v32, %v527_v31  ;;  %v1102_v40 = vpack.c.bf16 (!%p244_p9), %v530_v37, %v529_v36  ;;  %v531_v44 = vld [vmem:[%s1503_s3 + $0x70] sm:$0xff] (!%p244_p9)  ;;  %v532_v45 = vld [vmem:[%s1503_s3 + $0x78] sm:$0xff] (!%p244_p9)  ;;  %v857_v47 = vld [vmem:[%s1502_s2] ss:$0 sm:$0xff] (!%p244_p9)  ;;  %v1242_v32 = vmov (!%p244_p9), 0.0|0.0   ;;  %p1179_p11 = scmp.ne.s32.totalorder (!%p244_p9), %s1460_s24, %s1178_s10  ;;  %p1186_p1 = scmp.lt.s32.totalorder (!%p244_p9), %s1184_s17, %s1178_s10 }
  0x17   : > { %v1106_v46 = vpack.c.bf16 (!%p244_p9), %v532_v45, %v531_v44  ;;  %1110 = vmatprep.subr.bf16.mxu0 (!%p244_p9), %v1242_v32  ;;  %v874_v36 = vld [vmem:[%s1504_s4] ss:$0 sm:$0xff] (!%p244_p9) }
  0x18   : > { %s276_s6 = scalar_select %p275_p10, %s1344_s20, 31  ;;  %1077 = vmatpush3.bf16.msra.mxu1 %v1074_v6 }
  0x19   : > { %1079 = vmatprep.subr.bf16.mxu1 %v1078_v9  ;;  %p1180_p12 = pnand %p1179_p11, %p1325_p5  ;;  %p1187_p2 = por %p1186_p1, %p1185_p0 }
  0x1a   : > { %s856_s9 = sshll.u32 %s276_s6, 3  ;;  %s1458_s6 = scalar_lea.hbm %s1507_s7, %s1344_s20 }
  0x1b   : > { %s1360_s15 = scalar_lea.vmem %s1500_s0, %s856_s9  ;;  %s784_s9 = scalar_lea.sflag [#allocation4], %s272_s22 }
  0x1c   : > { %v280_v12 = vld [vmem:[%s1360_s15] sm:$0xff]  ;;  %v281_v13 = vld [vmem:[%s1360_s15 + $0x8] sm:$0xff]  ;;  %v282_v14 = vld [vmem:[%s1360_s15 + $0x10] sm:$0xff]  ;;  %p1181_p13 = pneg %p1180_p12 }
  0x1d   : > { %955 = vmatprep.mubr.msk.f32.mxu1 %vm307_vm0, %v280_v12  ;;  %v283_v18 = vld [vmem:[%s1360_s15 + $0x18] sm:$0xff]  ;;  %v284_v19 = vld [vmem:[%s1360_s15 + $0x20] sm:$0xff]  ;;  %v285_v23 = vld [vmem:[%s1360_s15 + $0x28] sm:$0xff] }
  0x1e   : > { %956 = vmatmul.mubr.msk.f32.vlgmr.msra.gmra.mrb[0].mxu1 %vm307_vm0, %v281_v13  ;;  %v286_v24 = vld [vmem:[%s1360_s15 + $0x30] sm:$0xff]  ;;  %v287_v28 = vld [vmem:[%s1360_s15 + $0x38] sm:$0xff]  ;;  %v288_v29 = vld [vmem:[%s1360_s15 + $0x40] sm:$0xff]  ;;  %p1188_p3 = pnand %p1187_p2, %p1181_p13 }
  0x1f   : > { %958 = vmatprep.mubr.msk.f32.mxu1 %vm307_vm0, %v282_v14  ;;  %1081 = vmatpush3.bf16.msra.mxu1 %v1078_v9  ;;  %v289_v33 = vld [vmem:[%s1360_s15 + $0x48] sm:$0xff]  ;;  %v290_v34 = vld [vmem:[%s1360_s15 + $0x50] sm:$0xff]  ;;  %v291_v38 = vld [vmem:[%s1360_s15 + $0x58] sm:$0xff] }
  0x20   : > { %1083 = vmatprep.subr.bf16.mxu1 %v1082_v15  ;;  %v292_v39 = vld [vmem:[%s1360_s15 + $0x60] sm:$0xff]  ;;  %v293_v41 = vld [vmem:[%s1360_s15 + $0x68] sm:$0xff]  ;;  %v294_v42 = vld [vmem:[%s1360_s15 + $0x70] sm:$0xff] }
  0x21   : > { %v295_v43 = vld [vmem:[%s1360_s15 + $0x78] sm:$0xff] }
  0x22   : > { %959 = vmatmul.mubr.msk.f32.gmra.mrb[2].mxu1 %vm307_vm0, %v283_v18 }
  0x23   : > { %961 = vmatprep.mubr.msk.f32.mxu1 %vm307_vm0, %v284_v19  ;;  %1085 = vmatpush3.bf16.msra.mxu1 %v1082_v15 }
  0x24   : > { %1087 = vmatprep.subr.bf16.mxu1 %v1086_v20 }
  0x26   : > { %962 = vmatmul.mubr.msk.f32.gmra.mrb[4].mxu1 %vm307_vm0, %v285_v23 }
  0x27   : > { %964 = vmatprep.mubr.msk.f32.mxu1 %vm307_vm0, %v286_v24  ;;  %1089 = vmatpush3.bf16.msra.mxu1 %v1086_v20 }
  0x28   : > { %1091 = vmatprep.subr.bf16.mxu1 %v1090_v25 }
  0x2a   : > { %965 = vmatmul.mubr.msk.f32.gmra.mrb[6].mxu1 %vm307_vm0, %v287_v28 }
  0x2b   : > { %967 = vmatprep.mubr.msk.f32.mxu1 %vm307_vm0, %v288_v29  ;;  %1093 = vmatpush3.bf16.msra.mxu1 %v1090_v25 }
  0x2c   : > { %1095 = vmatprep.subr.bf16.mxu1 %v1094_v30 }
  0x2e   : > { %968 = vmatmul.mubr.msk.f32.gmra.mrb[8].mxu1 %vm307_vm0, %v289_v33  ;;  %v1244_v33 = vmov 0.0  }
  0x2f   : > { %970 = vmatprep.mubr.msk.f32.mxu1 %vm307_vm0, %v290_v34  ;;  %1097 = vmatpush3.bf16.msra.mxu1 %v1094_v30  ;;  %v702_v34 = vld [vmem:[#allocation2] sm:$0x1] }
  0x30   : > { %1099 = vmatprep.subr.bf16.mxu1 %v1098_v35  ;;  %1067 = vmatprep.mubr.msk.f32.mxu0 %vm1243_vm1, %v1244_v33 }
  0x32   : > { %971 = vmatmul.mubr.msk.f32.gmra.mrb[10].mxu1 %vm307_vm0, %v291_v38 }
  0x33   : > { %973 = vmatprep.mubr.msk.f32.mxu1 %vm307_vm0, %v292_v39  ;;  %1101 = vmatpush3.bf16.msra.mxu1 %v1098_v35  ;;  %v1245_v35 = vmov 0  }
  0x34   : > { %1103 = vmatprep.subr.bf16.mxu1 %v1102_v40  ;;  %1177 = vset.pattern.permute.xlu0 %v1245_v35 }
  0x35   : > { %705 = vperm.xlu0 %1177, %v702_v34  }
  0x36   : > { %974 = vmatmul.mubr.msk.f32.gmra.mrb[12].mxu1 %vm307_vm0, %v293_v41 }
  0x37   : > { %976 = vmatprep.mubr.msk.f32.mxu1 %vm307_vm0, %v294_v42  ;;  %1105 = vmatpush3.bf16.msra.mxu1 %v1102_v40 }
  0x38   : > { %1107 = vmatprep.subr.bf16.mxu1 %v1106_v46 }
  0x3a   : > { %977 = vmatmul.mubr.msk.f32.gmra.mrb[14].mxu1 %vm307_vm0, %v295_v43 }
  0x3b   : > { %1109 = vmatpush3.bf16.msra.mxu1 %v1106_v46 }
  0xb4   : > { %v706_v34 = vpop.permute.xlu0 %705 }
  0xf1   : > { %v957_v48 = vpop.f32.mrb[0].mxu1 }
  0xf2   : > { %v428_v49 = vadd.f32 %v957_v48, %v857_v47  ;;  %v422_v50 = vpop.f32.mrb[1].mxu1 }
  0xf3   : > { %v423_v51 = vadd.f32 %v857_v47, %v422_v50 }
  0xf4   : > { %v502_v54 = vmax.f32 %v428_v49, 0.0 }
  0xf5   : > { %v501_v52 = vmax.f32 %v423_v51, 0.0  ;;  %v960_v53 = vpop.f32.mrb[2].mxu1 }
  0xf6   : > { %v438_v55 = vadd.f32 %v960_v53, %v857_v47  ;;  %v432_v56 = vpop.f32.mrb[3].mxu1 }
  0xf7   : > { %v433_v57 = vadd.f32 %v857_v47, %v432_v56  ;;  %1011 = vmatprep.mubr.f32.mxu1 %v501_v52 }
  0xf8   : > { %v504_v58 = vmax.f32 %v438_v55, 0.0  ;;  %1012 = vmatmul.mubr.f32.vlgmr.msra.gmra.mrb[16].mxu1 %v502_v54 }
  0xf9   : > { %v503_v59 = vmax.f32 %v433_v57, 0.0  ;;  %v963_v60 = vpop.f32.mrb[4].mxu1 }
  0xfa   : > { %v448_v61 = vadd.f32 %v963_v60, %v857_v47  ;;  %v442_v62 = vpop.f32.mrb[5].mxu1 }
  0xfb   : > { %1014 = vmatprep.mubr.f32.mxu1 %v503_v59  ;;  %v443_v63 = vadd.f32 %v857_v47, %v442_v62 }
  0xfc   : > { %1015 = vmatmul.mubr.f32.gmra.mrb[18].mxu1 %v504_v58  ;;  %v506_v0 = vmax.f32 %v448_v61, 0.0 }
  0xfd   : > { %v505_v1 = vmax.f32 %v443_v63, 0.0  ;;  %v966_v2 = vpop.f32.mrb[6].mxu1 }
  0xfe   : > { %v458_v3 = vadd.f32 %v966_v2, %v857_v47  ;;  %v452_v4 = vpop.f32.mrb[7].mxu1 }
  0xff   : > { %1017 = vmatprep.mubr.f32.mxu1 %v505_v1  ;;  %v453_v5 = vadd.f32 %v857_v47, %v452_v4 }
 0x100   : > { %1018 = vmatmul.mubr.f32.gmra.mrb[20].mxu1 %v506_v0  ;;  %v508_v6 = vmax.f32 %v458_v3, 0.0 }
 0x101   : > { %v507_v7 = vmax.f32 %v453_v5, 0.0  ;;  %v969_v8 = vpop.f32.mrb[8].mxu1 }
 0x102   : > { %v468_v9 = vadd.f32 %v969_v8, %v857_v47  ;;  %v462_v10 = vpop.f32.mrb[9].mxu1 }
 0x103   : > { %1020 = vmatprep.mubr.f32.mxu1 %v507_v7  ;;  %v463_v11 = vadd.f32 %v857_v47, %v462_v10 }
 0x104   : > { %1021 = vmatmul.mubr.f32.gmra.mrb[22].mxu1 %v508_v6  ;;  %v510_v12 = vmax.f32 %v468_v9, 0.0 }
 0x105   : > { %v509_v13 = vmax.f32 %v463_v11, 0.0  ;;  %v972_v14 = vpop.f32.mrb[10].mxu1 }
 0x106   : > { %v478_v15 = vadd.f32 %v972_v14, %v857_v47  ;;  %v472_v16 = vpop.f32.mrb[11].mxu1 }
 0x107   : > { %1023 = vmatprep.mubr.f32.mxu1 %v509_v13  ;;  %v473_v17 = vadd.f32 %v857_v47, %v472_v16 }
 0x108   : > { %1024 = vmatmul.mubr.f32.gmra.mrb[24].mxu1 %v510_v12  ;;  %v512_v18 = vmax.f32 %v478_v15, 0.0 }
 0x109   : > { %v511_v19 = vmax.f32 %v473_v17, 0.0  ;;  %v975_v20 = vpop.f32.mrb[12].mxu1 }
 0x10a   : > { %v488_v21 = vadd.f32 %v975_v20, %v857_v47  ;;  %v482_v22 = vpop.f32.mrb[13].mxu1 }
 0x10b   : > { %1026 = vmatprep.mubr.f32.mxu1 %v511_v19  ;;  %v483_v23 = vadd.f32 %v857_v47, %v482_v22 }
 0x10c   : > { %1027 = vmatmul.mubr.f32.gmra.mrb[26].mxu1 %v512_v18  ;;  %v514_v24 = vmax.f32 %v488_v21, 0.0 }
 0x10d   : > { %v513_v25 = vmax.f32 %v483_v23, 0.0  ;;  %v978_v26 = vpop.f32.mrb[14].mxu1 }
 0x10e   : > { %v498_v27 = vadd.f32 %v978_v26, %v857_v47  ;;  %v492_v28 = vpop.f32.mrb[15].mxu1 }
 0x10f   : > { %1029 = vmatprep.mubr.f32.mxu1 %v513_v25  ;;  %v493_v29 = vadd.f32 %v857_v47, %v492_v28 }
 0x110   : > { %1030 = vmatmul.mubr.f32.gmra.mrb[28].mxu1 %v514_v24  ;;  %v516_v30 = vmax.f32 %v498_v27, 0.0 }
 0x111   : > { %v515_v31 = vmax.f32 %v493_v29, 0.0  ;;  %v701_v29 = vld [vmem:[%s1505_s5] sm:$0x1] }
 0x113   : > { %1032 = vmatprep.mubr.f32.mxu1 %v515_v31 }
 0x114   : > { %1033 = vmatmul.mubr.f32.gmra.mrb[30].mxu1 %v516_v30  ;;  %v708_v30 = vlaneseq }
 0x116   : > { %v709_v31 = vshrl.u32 %v708_v30, 7 }
 0x118   : > { %v710_v33 = vsub.s32 0, %v709_v31 }
 0x11a   : > { %v711_v35 = vrot.slane %v706_v34, %v710_v33 }
 0x1cb   : > { %v1013_v37 = vpop.f32.mrb[16].mxu1 }
 0x1cc   : > { %v612_v38 = vadd.f32 %v1013_v37, %v874_v36  ;;  %v606_v39 = vpop.f32.mrb[17].mxu1 }
 0x1cd   : > { %v607_v40 = vadd.f32 %v874_v36, %v606_v39 }
 0x1ce   : > { %v686_v41 = vmax.f32 %v612_v38, 0.0 }
 0x1cf   : > { %v685_v42 = vmax.f32 %v607_v40, 0.0  ;;  %v1016_v43 = vpop.f32.mrb[18].mxu1 }
 0x1d0   : > { %v622_v44 = vadd.f32 %v1016_v43, %v874_v36  ;;  %v616_v45 = vpop.f32.mrb[19].mxu1 }
 0x1d1   : > { %v617_v46 = vadd.f32 %v874_v36, %v616_v45  ;;  %v1111_v47 = vpack.c.bf16 %v686_v41, %v685_v42 }
 0x1d2   : > { %v688_v48 = vmax.f32 %v622_v44, 0.0 }
 0x1d3   : > { %v687_v49 = vmax.f32 %v617_v46, 0.0  ;;  %1112 = vmatpush3.bf16.xpose.msra.mxu0 %v1111_v47  ;;  %v1019_v50 = vpop.f32.mrb[20].mxu1 }
 0x1d4   : > { %v632_v51 = vadd.f32 %v1019_v50, %v874_v36  ;;  %v626_v52 = vpop.f32.mrb[21].mxu1  ;;  %1113 = vmatprep.subr.bf16.mxu0 %v1242_v32 }
 0x1d5   : > { %v1114_v53 = vpack.c.bf16 %v688_v48, %v687_v49  ;;  %v627_v54 = vadd.f32 %v874_v36, %v626_v52 }
 0x1d6   : > { %v690_v55 = vmax.f32 %v632_v51, 0.0 }
 0x1d7   : > { %v689_v56 = vmax.f32 %v627_v54, 0.0  ;;  %v1022_v57 = vpop.f32.mrb[22].mxu1 }
 0x1d8   : > { %v642_v58 = vadd.f32 %v1022_v57, %v874_v36  ;;  %v636_v59 = vpop.f32.mrb[23].mxu1 }
 0x1d9   : > { %v1117_v60 = vpack.c.bf16 %v690_v55, %v689_v56  ;;  %v637_v61 = vadd.f32 %v874_v36, %v636_v59 }
 0x1da   : > { %v692_v62 = vmax.f32 %v642_v58, 0.0 }
 0x1db   : > { %1115 = vmatpush3.bf16.xpose.msra.mxu0 %v1114_v53  ;;  %v691_v63 = vmax.f32 %v637_v61, 0.0  ;;  %v1025_v0 = vpop.f32.mrb[24].mxu1 }
 0x1dc   : > { %1116 = vmatprep.subr.bf16.mxu0 %v1242_v32  ;;  %v652_v1 = vadd.f32 %v1025_v0, %v874_v36  ;;  %v646_v2 = vpop.f32.mrb[25].mxu1 }
 0x1dd   : > { %v1120_v3 = vpack.c.bf16 %v692_v62, %v691_v63  ;;  %v647_v4 = vadd.f32 %v874_v36, %v646_v2 }
 0x1de   : > { %v694_v5 = vmax.f32 %v652_v1, 0.0 }
 0x1df   : > { %v693_v6 = vmax.f32 %v647_v4, 0.0  ;;  %v1028_v7 = vpop.f32.mrb[26].mxu1 }
 0x1e0   : > { %v662_v8 = vadd.f32 %v1028_v7, %v874_v36  ;;  %v656_v9 = vpop.f32.mrb[27].mxu1 }
 0x1e1   : > { %v1123_v10 = vpack.c.bf16 %v694_v5, %v693_v6  ;;  %v657_v11 = vadd.f32 %v874_v36, %v656_v9 }
 0x1e2   : > { %v696_v12 = vmax.f32 %v662_v8, 0.0 }
 0x1e3   : > { %1118 = vmatpush3.bf16.xpose.msra.mxu0 %v1117_v60  ;;  %v695_v13 = vmax.f32 %v657_v11, 0.0  ;;  %v1031_v14 = vpop.f32.mrb[28].mxu1 }
 0x1e4   : > { %1119 = vmatprep.subr.bf16.mxu0 %v1242_v32  ;;  %v672_v15 = vadd.f32 %v1031_v14, %v874_v36  ;;  %v666_v16 = vpop.f32.mrb[29].mxu1 }
 0x1e5   : > { %v1126_v17 = vpack.c.bf16 %v696_v12, %v695_v13  ;;  %v667_v18 = vadd.f32 %v874_v36, %v666_v16 }
 0x1e6   : > { %v698_v19 = vmax.f32 %v672_v15, 0.0 }
 0x1e7   : > { %v697_v20 = vmax.f32 %v667_v18, 0.0  ;;  %v1034_v21 = vpop.f32.mrb[30].mxu1 }
 0x1e8   : > { %v682_v22 = vadd.f32 %v1034_v21, %v874_v36  ;;  %v676_v23 = vpop.f32.mrb[31].mxu1 }
 0x1e9   : > { %v1129_v24 = vpack.c.bf16 %v698_v19, %v697_v20  ;;  %v677_v25 = vadd.f32 %v874_v36, %v676_v23 }
 0x1ea   : > { %v700_v26 = vmax.f32 %v682_v22, 0.0 }
 0x1eb   : > { %1121 = vmatpush3.bf16.xpose.msra.mxu0 %v1120_v3  ;;  %v699_v27 = vmax.f32 %v677_v25, 0.0 }
 0x1ec   : > { %1122 = vmatprep.subr.bf16.mxu0 %v1242_v32 }
 0x1ed   : > { %v1132_v28 = vpack.c.bf16 %v700_v26, %v699_v27 }
 0x1f3   : > { %1124 = vmatpush3.bf16.xpose.msra.mxu0 %v1123_v10 }
 0x1f4   : > { %1125 = vmatprep.subr.bf16.mxu0 %v1242_v32 }
 0x1fb   : > { %1127 = vmatpush3.bf16.xpose.msra.mxu0 %v1126_v17 }
 0x1fc   : > { %1128 = vmatprep.subr.bf16.mxu0 %v1242_v32 }
 0x203   : > { %1130 = vmatpush3.bf16.xpose.msra.mxu0 %v1129_v24 }
 0x204   : > { %1131 = vmatprep.subr.bf16.mxu0 %v1242_v32 }
 0x20b   : > { %1133 = vmatpush3.bf16.xpose.msra.mxu0 %v1132_v28 }
 0x212   : > { %1068 = vmatmul.mubr.f32.vlgmr.msra.gmra.mrb[0].mxu0 %v701_v29 }
 0x2e5   : > { %v778_v36 = vpop.f32.mrb[0].mxu0 }
 0x2e6   : > { %v779_v37 = vadd.f32 %v778_v36, %v711_v35  ;;  %v1069_v38 = vpop.f32.mrb[1].mxu0 }
 0x2e8   : > { %782 = vst [vmem:[%s273_s23] sm:$0x1] %v779_v37 }
 0x2e9   : > { %1191 = shalt.err (!%p1188_p3)
}
 0x2ea   : > { %s1192_s20 = scalar_lea.hbm %s1458_s6, 16  ;;  %s1196_s19 = scalar_lea.hbm %s1507_s7, 32 }
 0x2eb   : > { %p1193_p4 = scmp.ne.s32.totalorder %s1458_s6, %s1192_s20  ;;  %p1197_p9 = scmp.lt.u32.totalorder %s1458_s6, %s1507_s7 }
 0x2ec   : > { %p1198_p10 = scmp.lt.u32.totalorder %s1196_s19, %s1192_s20  ;;  %p1200_p12 = scmp.lt.u32.totalorder %s1192_s20, %s1458_s6 }
 0x2ed   : > { %p1194_p7 = pnand %p1193_p4, %p1325_p5 }
 0x2ee   : > { %p1199_p11 = por %p1198_p10, %p1197_p9 }
 0x2ef   : > { %p1195_p8 = pneg %p1194_p7 }
 0x2f0   : > { %p1201_p13 = por %p1200_p12, %p1199_p11 }
 0x2f2   : > { %p1202_p0 = pnand %p1201_p13, %p1195_p8 }
 0x2f4   : > { %1205 = shalt.err (!%p1202_p0)
}
 0x2f5   : > { %1134 = dma.vmem_to_hbm [thread:$0]  (%p1325_p5), %s1460_s24, 16, %s1458_s6, %s784_s9  }
 0x2f6 PF: > { %p1140_p1 = scmp.ge.s32.totalorder %s1240_s29, 2  ;;  %s808_s23 = sand.u32 1, %s1228_s26  }
 0x2f7   : > { %s809_s25 = scalar_lea.sflag [#allocation4], %s808_s23 }
 0x2f8   : > { %p1137_p2 = pnand %p1140_p1, %p1329_p6 }
 0x2fa   : > { %1223 = dma.done.wait (!%p1137_p2), %s809_s25, 16  }
 0x2fb   : > { %1225 = vsyncadd (!%p1137_p2), %s809_s25, 4294967280  ;;  %p19_p3 = scmp.ge.s32.totalorder %s1313_s8, 4   ;;  %s1510_s26 = smov %s1232_s27 }
 0x2fc   : > { %s1511_s27 = smov %s1236_s28  ;;  %s1512_s28 = smov %s1323_s11 }
 0x2fd   : > { %s1513_s29 = smov %s1313_s8  ;;  %21 = sbr.rel (!%p19_p3) target bundleno = 6 (0x6), region = 83 }
 0x304   :  { %813 = vsyncpa [#allocation4], 1 }
 0x305   :  { %815 = vsyncpa [#allocation4 + $0x1], 1 }

</bundles_post_ra>
